<compile_context>
chip_gen: v7x
topology: tpu7x:2x2x1
jax: 0.10.0
libtpu: 0.0.40
codegen_flags: <defaults>
</compile_context>

<pallas_src>
import functools

import jax
import jax.numpy as jnp
from jax.experimental import pallas as pl
from jax.experimental.pallas import tpu as pltpu

BN_EPS = 1e-5
LANE = 128
BF16_TILE = 16   # bf16 packs 16 sublanes per vreg


def _round_up(x, m):
    return (x + m - 1) // m * m


# ---------------------------------------------------------------------------
# Shared conv body: one row strip, 3 matmuls with K = 3*Cin (kx folded).
# ---------------------------------------------------------------------------
def _conv_strip(xs_ref, w_ref, rows_out, w16):
    """xs_ref: ((S_H+2)*W16, K_PAD) bf16 width-im2col rows for this strip.
       w_ref:  (3, K_PAD, COUT_PAD) bf16, one tap per ky.
       Slice offsets 0 / W16 / 2*W16 and size rows_out are multiples of 16,
       so every shifted read is an aligned view.
    """
    acc = jnp.dot(xs_ref[0:rows_out, :], w_ref[0],
                  preferred_element_type=jnp.float32)
    acc += jnp.dot(xs_ref[w16:w16 + rows_out, :], w_ref[1],
                   preferred_element_type=jnp.float32)
    acc += jnp.dot(xs_ref[2 * w16:2 * w16 + rows_out, :], w_ref[2],
                   preferred_element_type=jnp.float32)
    return acc                                      # (rows_out, COUT_PAD) f32


# ---------------------------------------------------------------------------
# Pass 1: per-strip partial BN statistics (input read once, no conv writeback).
# ---------------------------------------------------------------------------
def _stats_kernel(xs_ref, w_ref, mask_ref, psum_ref, psumsq_ref, *,
                  rows_out, w16):
    acc = _conv_strip(xs_ref, w_ref, rows_out, w16)
    # mask rows: row 0 = 1.0 on valid output positions, rows 1..7 = 0, so the
    # masked reductions run on the MXU and the wrapper can just sum all rows.
    m8 = mask_ref[0]                                 # (8, rows_out) f32
    psum_ref[...] = jnp.dot(m8, acc,
                            preferred_element_type=jnp.float32)[None, None]
    psumsq_ref[...] = jnp.dot(m8, acc * acc,
                              preferred_element_type=jnp.float32)[None, None]


# ---------------------------------------------------------------------------
# Pass 2: recompute conv (f32 accumulator) and apply y = conv*scale + shift.
# ---------------------------------------------------------------------------
def _conv_apply_kernel(xs_ref, w_ref, scale_ref, shift_ref, out_ref, *,
                       rows_out, w16):
    acc = _conv_strip(xs_ref, w_ref, rows_out, w16)
    out_ref[...] = (acc * scale_ref[...] + shift_ref[...]).astype(out_ref.dtype)


@jax.jit
def conv_bn(x_nchw, weight_oihw, gamma, beta):
    """NCHW in -> NCHW out (f32), matching ConvBn.forward semantics."""
    N, Cin, H, W = x_nchw.shape
    Cout = weight_oihw.shape[0]

    W16 = _round_up(W, BF16_TILE)          # per-image-row stride, 16-aligned
    K = 3 * Cin                            # kx folded into contraction dim
    K_PAD = _round_up(K, BF16_TILE)
    COUT_PAD = _round_up(Cout, LANE)       # lane-dense output channels

    # Row-strip tiling: S_H output image rows per grid step, blocks ~1-2 MiB.
    bytes_out_row = W16 * COUT_PAD * 4
    bytes_in_row = W16 * K_PAD * 2
    S_H = max(1, min(H,
                     (2 * 1024 * 1024) // bytes_out_row,
                     (4 * 1024 * 1024) // bytes_in_row))
    H_STRIPS = pl.cdiv(H, S_H)
    H_PAD = H_STRIPS * S_H
    ROWS_OUT = S_H * W16                   # output rows per strip (mult of 16)
    ROWS_IN = (S_H + 2) * W16              # input rows per strip (2-row halo)

    # ---- glue: width-im2col layout (kx folded into channels), bf16 ----
    x_nhwc = jnp.transpose(x_nchw, (0, 2, 3, 1)).astype(jnp.float32)
    xp = jnp.pad(x_nhwc, ((0, 0), (1, 1), (1, 1), (0, 0)))       # (N,H+2,W+2,Cin)
    cols = jnp.stack([xp[:, :, 0:W, :], xp[:, :, 1:W + 1, :],
                      xp[:, :, 2:W + 2, :]], axis=3)             # (N,H+2,W,3,Cin)
    im2 = cols.reshape(N, H + 2, W, K)
    im2 = jnp.pad(im2, ((0, 0), (0, H_PAD - H), (0, W16 - W),
                        (0, K_PAD - K))).astype(jnp.bfloat16)    # (N,H_PAD+2,W16,K_PAD)
    # Duplicate the 2-row ky halo per strip so each block is a plain aligned
    # rectangle (no overlapping BlockSpec windows, no unaligned shifts).
    row_idx = (jnp.arange(H_STRIPS) * S_H)[:, None] + jnp.arange(S_H + 2)[None, :]
    xs = im2[:, row_idx]                         # (N, H_STRIPS, S_H+2, W16, K_PAD)
    xs = xs.reshape(N * H_STRIPS * ROWS_IN, K_PAD)

    # (Cout, Cin, 3, 3) -> (3, K_PAD, COUT_PAD); K index = kx*Cin + ci.
    w = jnp.transpose(weight_oihw, (2, 3, 1, 0)).reshape(3, K, Cout)
    w = jnp.pad(w, ((0, 0), (0, K_PAD - K), (0, COUT_PAD - Cout)))
    w = w.astype(jnp.bfloat16)

    # Per-strip valid-output-position mask (row 0 of 8; other rows zero).
    s_idx = jnp.arange(H_STRIPS)[:, None, None]
    h_idx = jnp.arange(S_H)[None, :, None]
    w_idx = jnp.arange(W16)[None, None, :]
    valid = ((s_idx * S_H + h_idx) < H) & (w_idx < W)            # (H_STRIPS,S_H,W16)
    mask = valid.astype(jnp.float32).reshape(H_STRIPS, 1, ROWS_OUT)
    mask = jnp.pad(mask, ((0, 0), (0, 7), (0, 0)))               # (H_STRIPS,8,ROWS_OUT)

    cparams = pltpu.CompilerParams(
        dimension_semantics=("parallel", "parallel"),
        vmem_limit_bytes=48 * 1024 * 1024)

    # ---- pass 1: partial per-channel sum / sumsq (fully parallel grid) ----
    kern1 = functools.partial(_stats_kernel, rows_out=ROWS_OUT, w16=W16)
    psum, psumsq = pl.pallas_call(
        kern1,
        grid=(N, H_STRIPS),
        in_specs=[
            pl.BlockSpec((ROWS_IN, K_PAD), lambda n, s: (n * H_STRIPS + s, 0)),
            pl.BlockSpec((3, K_PAD, COUT_PAD), lambda n, s: (0, 0, 0)),
            pl.BlockSpec((1, 8, ROWS_OUT), lambda n, s: (s, 0, 0)),
        ],
        out_specs=[
            pl.BlockSpec((1, 1, 8, COUT_PAD), lambda n, s: (n, s, 0, 0)),
            pl.BlockSpec((1, 1, 8, COUT_PAD), lambda n, s: (n, s, 0, 0)),
        ],
        out_shape=[
            jax.ShapeDtypeStruct((N, H_STRIPS, 8, COUT_PAD), jnp.float32),
            jax.ShapeDtypeStruct((N, H_STRIPS, 8, COUT_PAD), jnp.float32),
        ],
        compiler_params=cparams,
    )(xs, w, mask)

    # ---- tiny per-channel BN math on (COUT_PAD,) vectors (wrapper glue) ----
    count = float(N * H * W)
    total_sum = jnp.sum(psum, axis=(0, 1, 2))
    total_sq = jnp.sum(psumsq, axis=(0, 1, 2))
    mean = total_sum / count
    var = jnp.maximum(total_sq / count - mean * mean, 0.0)      # biased variance
    gamma_p = jnp.pad(gamma.astype(jnp.float32), (0, COUT_PAD - Cout))
    beta_p = jnp.pad(beta.astype(jnp.float32), (0, COUT_PAD - Cout))
    scale = gamma_p * jax.lax.rsqrt(var + BN_EPS)
    shift = beta_p - mean * scale
    scale2 = scale.reshape(1, COUT_PAD)
    shift2 = shift.reshape(1, COUT_PAD)

    # ---- pass 2: recompute conv + apply BN, write f32 directly ----
    kern2 = functools.partial(_conv_apply_kernel, rows_out=ROWS_OUT, w16=W16)
    out_flat = pl.pallas_call(
        kern2,
        grid=(N, H_STRIPS),
        in_specs=[
            pl.BlockSpec((ROWS_IN, K_PAD), lambda n, s: (n * H_STRIPS + s, 0)),
            pl.BlockSpec((3, K_PAD, COUT_PAD), lambda n, s: (0, 0, 0)),
            pl.BlockSpec((1, COUT_PAD), lambda n, s: (0, 0)),
            pl.BlockSpec((1, COUT_PAD), lambda n, s: (0, 0)),
        ],
        out_specs=pl.BlockSpec((ROWS_OUT, COUT_PAD),
                               lambda n, s: (n * H_STRIPS + s, 0)),
        out_shape=jax.ShapeDtypeStruct((N * H_STRIPS * ROWS_OUT, COUT_PAD),
                                       jnp.float32),
        compiler_params=cparams,
    )(xs, w, scale2, shift2)

    # ---- glue: drop all padding, back to NCHW ----
    out = out_flat.reshape(N, H_PAD, W16, COUT_PAD)[:, :H, :W, :Cout]
    return jnp.transpose(out, (0, 3, 1, 2))


def conv_bn_ref(x_nchw, weight_oihw, gamma, beta):
    """Pure-JAX reference (f32)."""
    y = jax.lax.conv_general_dilated(
        x_nchw.astype(jnp.float32), weight_oihw.astype(jnp.float32),
        window_strides=(1, 1), padding=((1, 1), (1, 1)),
        dimension_numbers=("NCHW", "OIHW", "NCHW"))
    mean = jnp.mean(y, axis=(0, 2, 3), keepdims=True)
    var = jnp.mean((y - mean) ** 2, axis=(0, 2, 3), keepdims=True)
    return ((y - mean) * jax.lax.rsqrt(var + BN_EPS)
            * gamma.reshape(1, -1, 1, 1) + beta.reshape(1, -1, 1, 1))


if __name__ == "__main__":
    # Small shapes implied by Conv2d(in_channels, out_channels, 3, 1, 1).
    N, Cin, H, W = 2, 4, 16, 16
    Cout = 8

    key = jax.random.PRNGKey(0)
    kx_, kw_ = jax.random.split(key)
    x = jax.random.normal(kx_, (N, Cin, H, W), dtype=jnp.float32)
    fan_in = Cin * 3 * 3
    weight = jax.random.normal(kw_, (Cout, Cin, 3, 3), dtype=jnp.float32) * (fan_in ** -0.5)
    # Non-trivial BN affine parameters to exercise the scale/shift path.
    gamma = 1.0 + 0.05 * jnp.arange(Cout, dtype=jnp.float32)
    beta = 0.02 * jnp.arange(Cout, dtype=jnp.float32) - 0.05

    out = jax.block_until_ready(conv_bn(x, weight, gamma, beta))
    assert out.shape == (N, Cout, H, W)
    assert out.dtype == jnp.float32

    # Reference matched to the deliberate bf16 input rounding (tight check)...
    x_bf = x.astype(jnp.bfloat16).astype(jnp.float32)
    w_bf = weight.astype(jnp.bfloat16).astype(jnp.float32)
    ref_bf16_inputs = conv_bn_ref(x_bf, w_bf, gamma, beta)
    assert jnp.allclose(out, ref_bf16_inputs, atol=1e-2, rtol=1e-2)

    # ...and a looser check against the full-f32 reference.
    ref_f32 = conv_bn_ref(x, weight, gamma, beta)
    assert jnp.allclose(out, ref_f32, atol=5e-2, rtol=5e-2)

    print("KERNEL_OK")
</pallas_src>

<mosaic_0001>
module attributes {stable_mosaic.version = 11 : i64} {
  func.func @_stats_kernel(%arg0: i32, %arg1: i32, %arg2: memref<288x16xbf16, #tpu.memory_space<vmem>>, %arg3: memref<3x16x128xbf16, #tpu.memory_space<vmem>>, %arg4: memref<1x8x256xf32, #tpu.memory_space<vmem>>, %arg5: memref<1x1x8x128xf32, #tpu.memory_space<vmem>>, %arg6: memref<1x1x8x128xf32, #tpu.memory_space<vmem>>) attributes {dimension_semantics = [#tpu.dimension_semantics<parallel>, #tpu.dimension_semantics<parallel>], iteration_bounds = array<i64: 2, 1>, scalar_prefetch = 0 : i64, scratch_operands = 0 : i64, tpu.core_type = #tpu.core_type<tc>, window_params = [{transform_indices = @transform_0, window_bounds = array<i64: 288, 16>}, {pipeline_mode = #tpu.pipeline_mode<synchronous>, transform_indices = @transform_1, window_bounds = array<i64: 3, 16, 128>}, {transform_indices = @transform_2, window_bounds = array<i64: 1, 8, 256>}, {transform_indices = @transform_3, window_bounds = array<i64: 1, 1, 8, 128>}, {transform_indices = @transform_4, window_bounds = array<i64: 1, 1, 8, 128>}]} {
    %c0 = arith.constant 0 : index
    %c0_0 = arith.constant 0 : index
    %0 = vector.load %arg2[%c0, %c0_0] : memref<288x16xbf16, #tpu.memory_space<vmem>>, vector<256x16xbf16>
    %c0_1 = arith.constant 0 : index
    %c0_2 = arith.constant 0 : index
    %c0_3 = arith.constant 0 : index
    %1 = vector.load %arg3[%c0_1, %c0_2, %c0_3] : memref<3x16x128xbf16, #tpu.memory_space<vmem>>, vector<1x16x128xbf16>
    %2 = vector.shape_cast %1 : vector<1x16x128xbf16> to vector<16x128xbf16>
    %cst = arith.constant dense<0.000000e+00> : vector<256x128xf32>
    %3 = tpu.matmul %0, %2, %cst {dimension_numbers = #tpu.dot_dimension_numbers<[1], [0], [0], [1], [0, 0, 1, 1], [], []>} : vector<256x16xbf16>, vector<16x128xbf16>, vector<256x128xf32> -> vector<256x128xf32>
    %c16 = arith.constant 16 : index
    %c0_4 = arith.constant 0 : index
    %4 = vector.load %arg2[%c16, %c0_4] : memref<288x16xbf16, #tpu.memory_space<vmem>>, vector<256x16xbf16>
    %c1 = arith.constant 1 : index
    %c0_5 = arith.constant 0 : index
    %c0_6 = arith.constant 0 : index
    %5 = vector.load %arg3[%c1, %c0_5, %c0_6] : memref<3x16x128xbf16, #tpu.memory_space<vmem>>, vector<1x16x128xbf16>
    %6 = vector.shape_cast %5 : vector<1x16x128xbf16> to vector<16x128xbf16>
    %cst_7 = arith.constant dense<0.000000e+00> : vector<256x128xf32>
    %7 = tpu.matmul %4, %6, %cst_7 {dimension_numbers = #tpu.dot_dimension_numbers<[1], [0], [0], [1], [0, 0, 1, 1], [], []>} : vector<256x16xbf16>, vector<16x128xbf16>, vector<256x128xf32> -> vector<256x128xf32>
    %8 = arith.addf %3, %7 : vector<256x128xf32>
    %c32 = arith.constant 32 : index
    %c0_8 = arith.constant 0 : index
    %9 = vector.load %arg2[%c32, %c0_8] : memref<288x16xbf16, #tpu.memory_space<vmem>>, vector<256x16xbf16>
    %c2 = arith.constant 2 : index
    %c0_9 = arith.constant 0 : index
    %c0_10 = arith.constant 0 : index
    %10 = vector.load %arg3[%c2, %c0_9, %c0_10] : memref<3x16x128xbf16, #tpu.memory_space<vmem>>, vector<1x16x128xbf16>
    %11 = vector.shape_cast %10 : vector<1x16x128xbf16> to vector<16x128xbf16>
    %cst_11 = arith.constant dense<0.000000e+00> : vector<256x128xf32>
    %12 = tpu.matmul %9, %11, %cst_11 {dimension_numbers = #tpu.dot_dimension_numbers<[1], [0], [0], [1], [0, 0, 1, 1], [], []>} : vector<256x16xbf16>, vector<16x128xbf16>, vector<256x128xf32> -> vector<256x128xf32>
    %13 = arith.addf %8, %12 : vector<256x128xf32>
    %c0_12 = arith.constant 0 : index
    %c0_13 = arith.constant 0 : index
    %c0_14 = arith.constant 0 : index
    %14 = vector.load %arg4[%c0_12, %c0_13, %c0_14] : memref<1x8x256xf32, #tpu.memory_space<vmem>>, vector<1x8x256xf32>
    %15 = vector.shape_cast %14 : vector<1x8x256xf32> to vector<8x256xf32>
    %cst_15 = arith.constant dense<0.000000e+00> : vector<8x128xf32>
    %16 = tpu.matmul %15, %13, %cst_15 {dimension_numbers = #tpu.dot_dimension_numbers<[1], [0], [0], [1], [0, 0, 1, 1], [], []>} : vector<8x256xf32>, vector<256x128xf32>, vector<8x128xf32> -> vector<8x128xf32>
    %17 = vector.shape_cast %16 : vector<8x128xf32> to vector<1x1x8x128xf32>
    %c0_16 = arith.constant 0 : index
    %c0_17 = arith.constant 0 : index
    %c0_18 = arith.constant 0 : index
    %c0_19 = arith.constant 0 : index
    %18 = vector.load %arg5[%c0_16, %c0_17, %c0_18, %c0_19] : memref<1x1x8x128xf32, #tpu.memory_space<vmem>>, vector<1x1x8x128xf32>
    tpu.vector_store %arg5[%c0_16, %c0_17, %c0_18, %c0_19], %17 {strides = array<i32>} : memref<1x1x8x128xf32, #tpu.memory_space<vmem>>, vector<1x1x8x128xf32>,
    %19 = arith.mulf %13, %13 : vector<256x128xf32>
    %cst_20 = arith.constant dense<0.000000e+00> : vector<8x128xf32>
    %20 = tpu.matmul %15, %19, %cst_20 {dimension_numbers = #tpu.dot_dimension_numbers<[1], [0], [0], [1], [0, 0, 1, 1], [], []>} : vector<8x256xf32>, vector<256x128xf32>, vector<8x128xf32> -> vector<8x128xf32>
    %21 = vector.shape_cast %20 : vector<8x128xf32> to vector<1x1x8x128xf32>
    %c0_21 = arith.constant 0 : index
    %c0_22 = arith.constant 0 : index
    %c0_23 = arith.constant 0 : index
    %c0_24 = arith.constant 0 : index
    %22 = vector.load %arg6[%c0_21, %c0_22, %c0_23, %c0_24] : memref<1x1x8x128xf32, #tpu.memory_space<vmem>>, vector<1x1x8x128xf32>
    tpu.vector_store %arg6[%c0_21, %c0_22, %c0_23, %c0_24], %21 {strides = array<i32>} : memref<1x1x8x128xf32, #tpu.memory_space<vmem>>, vector<1x1x8x128xf32>,
    return
  }
  func.func @transform_0(%arg0: i32, %arg1: i32) -> (i32, i32) {
    %c1_i32 = arith.constant 1 : i32
    %0 = arith.muli %arg0, %c1_i32 : i32
    %1 = arith.addi %0, %arg1 : i32
    %c0_i32 = arith.constant 0 : i32
    %c0_i32_0 = arith.constant 0 : i32
    return %1, %c0_i32 : i32, i32
  }
  func.func @transform_1(%arg0: i32, %arg1: i32) -> (i32, i32, i32) {
    %c0_i32 = arith.constant 0 : i32
    %c0_i32_0 = arith.constant 0 : i32
    %c0_i32_1 = arith.constant 0 : i32
    %c0_i32_2 = arith.constant 0 : i32
    return %c0_i32, %c0_i32_0, %c0_i32_1 : i32, i32, i32
  }
  func.func @transform_2(%arg0: i32, %arg1: i32) -> (i32, i32, i32) {
    %c0_i32 = arith.constant 0 : i32
    %c0_i32_0 = arith.constant 0 : i32
    %c0_i32_1 = arith.constant 0 : i32
    return %arg1, %c0_i32, %c0_i32_0 : i32, i32, i32
  }
  func.func @transform_3(%arg0: i32, %arg1: i32) -> (i32, i32, i32, i32) {
    %c0_i32 = arith.constant 0 : i32
    %c0_i32_0 = arith.constant 0 : i32
    %c0_i32_1 = arith.constant 0 : i32
    return %arg0, %arg1, %c0_i32, %c0_i32_0 : i32, i32, i32, i32
  }
  func.func @transform_4(%arg0: i32, %arg1: i32) -> (i32, i32, i32, i32) {
    %c0_i32 = arith.constant 0 : i32
    %c0_i32_0 = arith.constant 0 : i32
    %c0_i32_1 = arith.constant 0 : i32
    return %arg0, %arg1, %c0_i32, %c0_i32_0 : i32, i32, i32, i32
  }
}

module attributes {stable_mosaic.version = 11 : i64} {
  func.func @_conv_apply_kernel(%arg0: i32, %arg1: i32, %arg2: memref<288x16xbf16, #tpu.memory_space<vmem>>, %arg3: memref<3x16x128xbf16, #tpu.memory_space<vmem>>, %arg4: memref<1x128xf32, #tpu.memory_space<vmem>>, %arg5: memref<1x128xf32, #tpu.memory_space<vmem>>, %arg6: memref<256x128xf32, #tpu.memory_space<vmem>>) attributes {dimension_semantics = [#tpu.dimension_semantics<parallel>, #tpu.dimension_semantics<parallel>], iteration_bounds = array<i64: 2, 1>, scalar_prefetch = 0 : i64, scratch_operands = 0 : i64, tpu.core_type = #tpu.core_type<tc>, window_params = [{transform_indices = @transform_0, window_bounds = array<i64: 288, 16>}, {pipeline_mode = #tpu.pipeline_mode<synchronous>, transform_indices = @transform_1, window_bounds = array<i64: 3, 16, 128>}, {pipeline_mode = #tpu.pipeline_mode<synchronous>, transform_indices = @transform_2, window_bounds = array<i64: 1, 128>}, {pipeline_mode = #tpu.pipeline_mode<synchronous>, transform_indices = @transform_3, window_bounds = array<i64: 1, 128>}, {transform_indices = @transform_4, window_bounds = array<i64: 256, 128>}]} {
    %c0 = arith.constant 0 : index
    %c0_0 = arith.constant 0 : index
    %0 = vector.load %arg2[%c0, %c0_0] : memref<288x16xbf16, #tpu.memory_space<vmem>>, vector<256x16xbf16>
    %c0_1 = arith.constant 0 : index
    %c0_2 = arith.constant 0 : index
    %c0_3 = arith.constant 0 : index
    %1 = vector.load %arg3[%c0_1, %c0_2, %c0_3] : memref<3x16x128xbf16, #tpu.memory_space<vmem>>, vector<1x16x128xbf16>
    %2 = vector.shape_cast %1 : vector<1x16x128xbf16> to vector<16x128xbf16>
    %cst = arith.constant dense<0.000000e+00> : vector<256x128xf32>
    %3 = tpu.matmul %0, %2, %cst {dimension_numbers = #tpu.dot_dimension_numbers<[1], [0], [0], [1], [0, 0, 1, 1], [], []>} : vector<256x16xbf16>, vector<16x128xbf16>, vector<256x128xf32> -> vector<256x128xf32>
    %c16 = arith.constant 16 : index
    %c0_4 = arith.constant 0 : index
    %4 = vector.load %arg2[%c16, %c0_4] : memref<288x16xbf16, #tpu.memory_space<vmem>>, vector<256x16xbf16>
    %c1 = arith.constant 1 : index
    %c0_5 = arith.constant 0 : index
    %c0_6 = arith.constant 0 : index
    %5 = vector.load %arg3[%c1, %c0_5, %c0_6] : memref<3x16x128xbf16, #tpu.memory_space<vmem>>, vector<1x16x128xbf16>
    %6 = vector.shape_cast %5 : vector<1x16x128xbf16> to vector<16x128xbf16>
    %cst_7 = arith.constant dense<0.000000e+00> : vector<256x128xf32>
    %7 = tpu.matmul %4, %6, %cst_7 {dimension_numbers = #tpu.dot_dimension_numbers<[1], [0], [0], [1], [0, 0, 1, 1], [], []>} : vector<256x16xbf16>, vector<16x128xbf16>, vector<256x128xf32> -> vector<256x128xf32>
    %8 = arith.addf %3, %7 : vector<256x128xf32>
    %c32 = arith.constant 32 : index
    %c0_8 = arith.constant 0 : index
    %9 = vector.load %arg2[%c32, %c0_8] : memref<288x16xbf16, #tpu.memory_space<vmem>>, vector<256x16xbf16>
    %c2 = arith.constant 2 : index
    %c0_9 = arith.constant 0 : index
    %c0_10 = arith.constant 0 : index
    %10 = vector.load %arg3[%c2, %c0_9, %c0_10] : memref<3x16x128xbf16, #tpu.memory_space<vmem>>, vector<1x16x128xbf16>
    %11 = vector.shape_cast %10 : vector<1x16x128xbf16> to vector<16x128xbf16>
    %cst_11 = arith.constant dense<0.000000e+00> : vector<256x128xf32>
    %12 = tpu.matmul %9, %11, %cst_11 {dimension_numbers = #tpu.dot_dimension_numbers<[1], [0], [0], [1], [0, 0, 1, 1], [], []>} : vector<256x16xbf16>, vector<16x128xbf16>, vector<256x128xf32> -> vector<256x128xf32>
    %13 = arith.addf %8, %12 : vector<256x128xf32>
    %c0_12 = arith.constant 0 : index
    %c0_13 = arith.constant 0 : index
    %14 = vector.load %arg4[%c0_12, %c0_13] : memref<1x128xf32, #tpu.memory_space<vmem>>, vector<1x128xf32>
    %15 = vector.broadcast %14 : vector<1x128xf32> to vector<256x128xf32>
    %16 = arith.mulf %13, %15 : vector<256x128xf32>
    %c0_14 = arith.constant 0 : index
    %c0_15 = arith.constant 0 : index
    %17 = vector.load %arg5[%c0_14, %c0_15] : memref<1x128xf32, #tpu.memory_space<vmem>>, vector<1x128xf32>
    %18 = vector.broadcast %17 : vector<1x128xf32> to vector<256x128xf32>
    %19 = arith.addf %16, %18 : vector<256x128xf32>
    %c0_16 = arith.constant 0 : index
    %c0_17 = arith.constant 0 : index
    %20 = vector.load %arg6[%c0_16, %c0_17] : memref<256x128xf32, #tpu.memory_space<vmem>>, vector<256x128xf32>
    tpu.vector_store %arg6[%c0_16, %c0_17], %19 {strides = array<i32>} : memref<256x128xf32, #tpu.memory_space<vmem>>, vector<256x128xf32>,
    return
  }
  func.func @transform_0(%arg0: i32, %arg1: i32) -> (i32, i32) {
    %c1_i32 = arith.constant 1 : i32
    %0 = arith.muli %arg0, %c1_i32 : i32
    %1 = arith.addi %0, %arg1 : i32
    %c0_i32 = arith.constant 0 : i32
    %c0_i32_0 = arith.constant 0 : i32
    return %1, %c0_i32 : i32, i32
  }
  func.func @transform_1(%arg0: i32, %arg1: i32) -> (i32, i32, i32) {
    %c0_i32 = arith.constant 0 : i32
    %c0_i32_0 = arith.constant 0 : i32
    %c0_i32_1 = arith.constant 0 : i32
    %c0_i32_2 = arith.constant 0 : i32
    return %c0_i32, %c0_i32_0, %c0_i32_1 : i32, i32, i32
  }
  func.func @transform_2(%arg0: i32, %arg1: i32) -> (i32, i32) {
    %c0_i32 = arith.constant 0 : i32
    %c0_i32_0 = arith.constant 0 : i32
    %c0_i32_1 = arith.constant 0 : i32
    return %c0_i32, %c0_i32_0 : i32, i32
  }
  func.func @transform_3(%arg0: i32, %arg1: i32) -> (i32, i32) {
    %c0_i32 = arith.constant 0 : i32
    %c0_i32_0 = arith.constant 0 : i32
    %c0_i32_1 = arith.constant 0 : i32
    return %c0_i32, %c0_i32_0 : i32, i32
  }
  func.func @transform_4(%arg0: i32, %arg1: i32) -> (i32, i32) {
    %c1_i32 = arith.constant 1 : i32
    %0 = arith.muli %arg0, %c1_i32 : i32
    %1 = arith.addi %0, %arg1 : i32
    %c0_i32 = arith.constant 0 : i32
    %c0_i32_0 = arith.constant 0 : i32
    return %1, %c0_i32 : i32, i32
  }
}

</mosaic_0001>

<bundles_post_ra>
// kernel: conv_bn.3
= control target key start
LH: loop header
LB: loop body
LE: loop exit
PB: predicated region body
PF: predicated region fallthrough
CT: control target
= control target key end

     0   :  { %s1704_s15 = smov 0   ;;  %s1706_s16 = smov 0   ;;  %s1953_s0 = inlined_call_operand.vmem [shape: bf16[576,16], index: 0, kind: input, shape index: {}]   ;;  %s1954_s1 = inlined_call_operand.vmem [shape: bf16[3,16,128], index: 1, kind: input, shape index: {}]   ;;  %s1955_s2 = inlined_call_operand.vmem [shape: f32[1,128], index: 2, kind: input, shape index: {}]   ;;  %s1956_s3 = inlined_call_operand.vmem [shape: f32[1,128], index: 3, kind: input, shape index: {}]   ;;  %s1957_s4 = inlined_call_operand.vmem [shape: f32[512,128], index: 4, kind: output, shape index: {}]  }
   0x1   :  { %s1708_s17 = smov 0  }
   0x2 LB: > { %s26_s18 = sadd.s32 1, %s1673_s16  ;;  %p1280_p0 = scmp.ge.s32.totalorder %s1677_s17, 1  ;;  %s1677_s17 = sphi %s1708_s17, %s14_s17   ;;  %s1673_s16 = sphi %s1706_s16, %s1959_s16   ;;  %s1669_s15 = sphi %s1704_s15, %s1958_s15  }
   0x3   : > { %p28_p1 = scmp.ge.s32.totalorder %s26_s18, 2  ;;  %p181_p2 = scmp.lt.s32.totalorder %s1677_s17, 3 }
   0x5   : > { %s1961_s18 = smov (%p28_p1, %s26_s18), 0  ;;  %p182_p3 = pnand %p1280_p0, %p181_p2 }
   0x6   : > { %v1619_v0 = vld [vmem:[%s1954_s1 + $0x8] sm:$0xff] (!%p182_p3)   ;;  %s210_s21 = smul.u32 (!%p182_p3), 36, %s1669_s15  ;;  %v1620_v1 = vld [vmem:[%s1954_s1] sm:$0xff] (!%p182_p3)   ;;  %v1623_v2 = vld [vmem:[%s1954_s1 + $0x10] sm:$0xff] (!%p182_p3)   ;;  %vm351_vm0 = vcmask (!%p182_p3), 130048   ;;  %s1282_s30 = sshll.u32 (!%p182_p3), %s1669_s15, 5 }
   0x7   : > { %185 = sbr.rel (%p182_p3) target bundleno = 329 (0x149), region = 36  ;;  %1427 = vmatprep.subr.bf16.mxu1 (!%p182_p3), %v1619_v0  ;;  %1461 = vmatprep.subr.bf16.mxu0 (!%p182_p3), %v1620_v1  ;;  %p219_p5 = scmp.lt.s32.totalorder (!%p182_p3), %s1282_s30, 63  ;;  %v1832_v53 = vld [vmem:[%s1955_s2] ss:$0 sm:$0xff] (!%p182_p3) }
   0x8   : > { %p211_p4 = scmp.lt.s32.totalorder (!%p182_p3), %s210_s21, 71  ;;  %1428 = vmatpush3.bf16.msra.mxu1 (!%p182_p3), %v1619_v0  ;;  %1462 = vmatpush3.bf16.msra.mxu0 (!%p182_p3), %v1620_v1  ;;  %v1837_v56 = vld [vmem:[%s1956_s3] ss:$0 sm:$0xff] (!%p182_p3) }
   0x9   : > { %1529 = vmatprep.subr.bf16.mxu1 (!%p182_p3), %v1620_v1  ;;  %1495 = vmatprep.subr.bf16.mxu0 (!%p182_p3), %v1623_v2 }
   0xe   : > { %s1963_s21 = smov (!%p211_p4, %s210_s21), 71  ;;  %s1965_s30 = smov (!%p219_p5, %s1282_s30), 63 }
   0xf   : > { %s1281_s26 = sshll.u32 %s1963_s21, 2  ;;  %s1283_s7 = sshll.u32 %s1965_s30, 3 }
  0x10   : > { %s1737_s29 = scalar_lea.vmem %s1953_s0, %s1281_s26  ;;  %s1843_s12 = scalar_lea.vmem %s1957_s4, %s1283_s7 }
  0x11   : > { %v1621_v3 = vld [vmem:[%s1737_s29 + $0x8] sm:$0xff]   ;;  %v1622_v4 = vld [vmem:[%s1737_s29] sm:$0xff]   ;;  %v1624_v5 = vld [vmem:[%s1737_s29 + $0x10] sm:$0xff]  }
  0x12   : > { %1429 = vmatprep.mubr.msk.bf16.mxu1 %vm351_vm0, %v1621_v3  ;;  %1463 = vmatprep.mubr.msk.bf16.mxu0 %vm351_vm0, %v1622_v4  ;;  %v1625_v6 = vld [vmem:[%s1737_s29 + $0x18] sm:$0xff]   ;;  %v1626_v7 = vld [vmem:[%s1737_s29 + $0x20] sm:$0xff]   ;;  %v1627_v8 = vld [vmem:[%s1737_s29 + $0x28] sm:$0xff]  }
  0x13   : > { %1430 = vmatmul.mubr.msk.bf16.vlgmr.msra.gmra.mrb[0].mxu1 %vm351_vm0, %v1624_v5  ;;  %1464 = vmatmul.mubr.msk.bf16.vlgmr.msra.gmra.mrb[0].mxu0 %vm351_vm0, %v1621_v3  ;;  %v1628_v9 = vld [vmem:[%s1737_s29 + $0x30] sm:$0xff]   ;;  %v1629_v10 = vld [vmem:[%s1737_s29 + $0x38] sm:$0xff]   ;;  %v1630_v11 = vld [vmem:[%s1737_s29 + $0x40] sm:$0xff]  }
  0x14   : > { %1530 = vmatpush3.bf16.msra.mxu1 %v1620_v1  ;;  %1496 = vmatpush3.bf16.msra.mxu0 %v1623_v2  ;;  %v1631_v12 = vld [vmem:[%s1737_s29 + $0x48] sm:$0xff]   ;;  %v1632_v13 = vld [vmem:[%s1737_s29 + $0x10] sm:$0xff]   ;;  %v1634_v15 = vld [vmem:[%s1737_s29 + $0x18] sm:$0xff]  }
  0x15   : > { %1433 = vmatprep.mubr.msk.bf16.mxu1 %vm351_vm0, %v1625_v6  ;;  %1467 = vmatprep.mubr.msk.bf16.mxu0 %vm351_vm0, %v1624_v5  ;;  %v1633_v14 = vld [vmem:[%s1737_s29 + $0x50] sm:$0xff]   ;;  %v1635_v16 = vld [vmem:[%s1737_s29 + $0x58] sm:$0xff]   ;;  %v1636_v17 = vld [vmem:[%s1737_s29 + $0x20] sm:$0xff]  }
  0x16   : > { %v1637_v18 = vld [vmem:[%s1737_s29 + $0x60] sm:$0xff]   ;;  %v1638_v19 = vld [vmem:[%s1737_s29 + $0x28] sm:$0xff]   ;;  %v1640_v21 = vld [vmem:[%s1737_s29 + $0x30] sm:$0xff]  }
  0x17   : > { %v1639_v20 = vld [vmem:[%s1737_s29 + $0x68] sm:$0xff]   ;;  %v1641_v22 = vld [vmem:[%s1737_s29 + $0x70] sm:$0xff]   ;;  %v1642_v23 = vld [vmem:[%s1737_s29 + $0x38] sm:$0xff]  }
  0x18   : > { %v1643_v24 = vld [vmem:[%s1737_s29 + $0x78] sm:$0xff]   ;;  %v1644_v25 = vld [vmem:[%s1737_s29 + $0x40] sm:$0xff]   ;;  %v1646_v27 = vld [vmem:[%s1737_s29 + $0x48] sm:$0xff]  }
  0x19   : > { %v1645_v26 = vld [vmem:[%s1737_s29 + $0x80] sm:$0xff]   ;;  %v1647_v28 = vld [vmem:[%s1737_s29 + $0x50] sm:$0xff]   ;;  %v1648_v29 = vld [vmem:[%s1737_s29 + $0x58] sm:$0xff]  }
  0x1a   : > { %v1649_v30 = vld [vmem:[%s1737_s29 + $0x60] sm:$0xff]   ;;  %v1650_v31 = vld [vmem:[%s1737_s29 + $0x68] sm:$0xff]   ;;  %v1651_v32 = vld [vmem:[%s1737_s29 + $0x70] sm:$0xff]  }
  0x1b   : > { %1434 = vmatmul.mubr.msk.bf16.gmra.mrb[4].mxu1 %vm351_vm0, %v1626_v7  ;;  %1468 = vmatmul.mubr.msk.bf16.gmra.mrb[4].mxu0 %vm351_vm0, %v1625_v6  ;;  %v1652_v33 = vld [vmem:[%s1737_s29 + $0x78] sm:$0xff]   ;;  %v1653_v34 = vld [vmem:[%s1737_s29 + $0x80] sm:$0xff]   ;;  %v1654_v35 = vld [vmem:[%s1737_s29 + $0x88] sm:$0xff]  }
  0x1c   : > { %1437 = vmatprep.mubr.msk.bf16.mxu1 %vm351_vm0, %v1627_v8  ;;  %1471 = vmatprep.mubr.msk.bf16.mxu0 %vm351_vm0, %v1626_v7 }
  0x23   : > { %1438 = vmatmul.mubr.msk.bf16.gmra.mrb[8].mxu1 %vm351_vm0, %v1628_v9  ;;  %1472 = vmatmul.mubr.msk.bf16.gmra.mrb[8].mxu0 %vm351_vm0, %v1627_v8 }
  0x24   : > { %1441 = vmatprep.mubr.msk.bf16.mxu1 %vm351_vm0, %v1629_v10  ;;  %1475 = vmatprep.mubr.msk.bf16.mxu0 %vm351_vm0, %v1628_v9 }
  0x2b   : > { %1442 = vmatmul.mubr.msk.bf16.gmra.mrb[12].mxu1 %vm351_vm0, %v1630_v11  ;;  %1476 = vmatmul.mubr.msk.bf16.gmra.mrb[12].mxu0 %vm351_vm0, %v1629_v10 }
  0x2c   : > { %1445 = vmatprep.mubr.msk.bf16.mxu1 %vm351_vm0, %v1631_v12  ;;  %1497 = vmatprep.mubr.msk.bf16.mxu0 %vm351_vm0, %v1632_v13 }
  0x33   : > { %1446 = vmatmul.mubr.msk.bf16.gmra.mrb[16].mxu1 %vm351_vm0, %v1633_v14  ;;  %1498 = vmatmul.mubr.msk.bf16.vlgmr.msra.gmra.mrb[0].mxu0 %vm351_vm0, %v1634_v15 }
  0x34   : > { %1449 = vmatprep.mubr.msk.bf16.mxu1 %vm351_vm0, %v1635_v16  ;;  %1501 = vmatprep.mubr.msk.bf16.mxu0 %vm351_vm0, %v1636_v17 }
  0x3b   : > { %1450 = vmatmul.mubr.msk.bf16.gmra.mrb[20].mxu1 %vm351_vm0, %v1637_v18  ;;  %1502 = vmatmul.mubr.msk.bf16.gmra.mrb[4].mxu0 %vm351_vm0, %v1638_v19 }
  0x3c   : > { %1453 = vmatprep.mubr.msk.bf16.mxu1 %vm351_vm0, %v1639_v20  ;;  %1505 = vmatprep.mubr.msk.bf16.mxu0 %vm351_vm0, %v1640_v21 }
  0x43   : > { %1454 = vmatmul.mubr.msk.bf16.gmra.mrb[24].mxu1 %vm351_vm0, %v1641_v22  ;;  %1506 = vmatmul.mubr.msk.bf16.gmra.mrb[8].mxu0 %vm351_vm0, %v1642_v23 }
  0x44   : > { %1457 = vmatprep.mubr.msk.bf16.mxu1 %vm351_vm0, %v1643_v24  ;;  %1509 = vmatprep.mubr.msk.bf16.mxu0 %vm351_vm0, %v1644_v25 }
  0x4b   : > { %1458 = vmatmul.mubr.msk.bf16.gmra.mrb[28].mxu1 %vm351_vm0, %v1645_v26  ;;  %1510 = vmatmul.mubr.msk.bf16.gmra.mrb[12].mxu0 %vm351_vm0, %v1646_v27 }
  0x4c   : > { %1479 = vmatprep.mubr.msk.bf16.mxu1 %vm351_vm0, %v1630_v11  ;;  %1513 = vmatprep.mubr.msk.bf16.mxu0 %vm351_vm0, %v1647_v28 }
  0x53   : > { %1480 = vmatmul.mubr.msk.bf16.vlgmr.msra.gmra.mrb[16].mxu1 %vm351_vm0, %v1631_v12  ;;  %1514 = vmatmul.mubr.msk.bf16.gmra.mrb[16].mxu0 %vm351_vm0, %v1648_v29 }
  0x54   : > { %1483 = vmatprep.mubr.msk.bf16.mxu1 %vm351_vm0, %v1633_v14  ;;  %1517 = vmatprep.mubr.msk.bf16.mxu0 %vm351_vm0, %v1649_v30 }
  0x5b   : > { %1484 = vmatmul.mubr.msk.bf16.gmra.mrb[20].mxu1 %vm351_vm0, %v1635_v16  ;;  %1518 = vmatmul.mubr.msk.bf16.gmra.mrb[20].mxu0 %vm351_vm0, %v1650_v31 }
  0x5c   : > { %1487 = vmatprep.mubr.msk.bf16.mxu1 %vm351_vm0, %v1637_v18  ;;  %1521 = vmatprep.mubr.msk.bf16.mxu0 %vm351_vm0, %v1651_v32 }
  0x63   : > { %1488 = vmatmul.mubr.msk.bf16.gmra.mrb[24].mxu1 %vm351_vm0, %v1639_v20  ;;  %1522 = vmatmul.mubr.msk.bf16.gmra.mrb[24].mxu0 %vm351_vm0, %v1652_v33 }
  0x64   : > { %1491 = vmatprep.mubr.msk.bf16.mxu1 %vm351_vm0, %v1641_v22  ;;  %1525 = vmatprep.mubr.msk.bf16.mxu0 %vm351_vm0, %v1653_v34 }
  0x6b   : > { %1492 = vmatmul.mubr.msk.bf16.gmra.mrb[28].mxu1 %vm351_vm0, %v1643_v24  ;;  %1526 = vmatmul.mubr.msk.bf16.gmra.mrb[28].mxu0 %vm351_vm0, %v1654_v35 }
  0xe6   : > { %v1431_v36 = vpop.f32.mrb[0].mxu1 }
  0xe7   : > { %v434_v37 = vpop.f32.mrb[1].mxu1 }
  0xe8   : > { %v1432_v38 = vpop.f32.mrb[2].mxu1 }
  0xe9   : > { %v437_v39 = vpop.f32.mrb[3].mxu1 }
  0xee   : > { %v1435_v40 = vpop.f32.mrb[4].mxu1 }
  0xef   : > { %v450_v41 = vpop.f32.mrb[5].mxu1 }
  0xf0   : > { %v1436_v42 = vpop.f32.mrb[6].mxu1 }
  0xf1   : > { %v453_v43 = vpop.f32.mrb[7].mxu1 }
  0xf6   : > { %v1439_v44 = vpop.f32.mrb[8].mxu1 }
  0xf7   : > { %v466_v45 = vpop.f32.mrb[9].mxu1 }
  0xf8   : > { %v1440_v46 = vpop.f32.mrb[10].mxu1 }
  0xf9   : > { %v469_v47 = vpop.f32.mrb[11].mxu1 }
  0xfe   : > { %v1821_v48 = vpop.f32.mrb[12].mxu1 }
  0xff   : > { %v1823_v49 = vpop.f32.mrb[13].mxu1 }
 0x100   : > { %v1825_v50 = vpop.f32.mrb[14].mxu1 }
 0x101   : > { %v1827_v51 = vpop.f32.mrb[15].mxu1 }
 0x106   : > { %v1499_v52 = vpop.f32.mrb[0].mxu0 }
 0x107   : > { %v1531_v54 = vadd.f32 %v1499_v52, %v1431_v36  ;;  %v939_v55 = vpop.f32.mrb[1].mxu0 }
 0x108   : > { %v1532_v57 = vadd.f32 %v939_v55, %v434_v37  ;;  %v1500_v58 = vpop.f32.mrb[2].mxu0 }
 0x109   : > { %v1107_v59 = vmul.f32 %v1531_v54, %v1832_v53  ;;  %v1533_v60 = vadd.f32 %v1500_v58, %v1432_v38  ;;  %v942_v61 = vpop.f32.mrb[3].mxu0 }
 0x10a   : > { %v1105_v62 = vmul.f32 %v1532_v57, %v1832_v53  ;;  %v1534_v63 = vadd.f32 %v942_v61, %v437_v39 }
 0x10b   : > { %v1146_v0 = vadd.f32 %v1837_v56, %v1107_v59  ;;  %v1108_v1 = vmul.f32 %v1533_v60, %v1832_v53 }
 0x10c   : > { %v1144_v2 = vadd.f32 %v1837_v56, %v1105_v62  ;;  %v1106_v3 = vmul.f32 %v1534_v63, %v1832_v53 }
 0x10d   : > { %1178 = vst [vmem:[%s1843_s12 + $0x10] sm:$0xff] %v1146_v0  ;;  %v1147_v4 = vadd.f32 %v1837_v56, %v1108_v1 }
 0x10e   : > { %1176 = vst [vmem:[%s1843_s12] sm:$0xff] %v1144_v2  ;;  %v1145_v5 = vadd.f32 %v1837_v56, %v1106_v3  ;;  %v1503_v6 = vpop.f32.mrb[4].mxu0 }
 0x10f   : > { %1179 = vst [vmem:[%s1843_s12 + $0x18] sm:$0xff] %v1147_v4  ;;  %v1535_v7 = vadd.f32 %v1503_v6, %v1435_v40  ;;  %v955_v8 = vpop.f32.mrb[5].mxu0 }
 0x110   : > { %1177 = vst [vmem:[%s1843_s12 + $0x8] sm:$0xff] %v1145_v5  ;;  %v1536_v9 = vadd.f32 %v955_v8, %v450_v41  ;;  %v1504_v10 = vpop.f32.mrb[6].mxu0 }
 0x111   : > { %v1111_v11 = vmul.f32 %v1535_v7, %v1832_v53  ;;  %v1537_v12 = vadd.f32 %v1504_v10, %v1436_v42  ;;  %v958_v13 = vpop.f32.mrb[7].mxu0 }
 0x112   : > { %v1109_v14 = vmul.f32 %v1536_v9, %v1832_v53  ;;  %v1538_v15 = vadd.f32 %v958_v13, %v453_v43 }
 0x113   : > { %v1150_v16 = vadd.f32 %v1837_v56, %v1111_v11  ;;  %v1112_v17 = vmul.f32 %v1537_v12, %v1832_v53 }
 0x114   : > { %v1148_v18 = vadd.f32 %v1837_v56, %v1109_v14  ;;  %v1110_v19 = vmul.f32 %v1538_v15, %v1832_v53 }
 0x115   : > { %1182 = vst [vmem:[%s1843_s12 + $0x30] sm:$0xff] %v1150_v16  ;;  %v1151_v20 = vadd.f32 %v1837_v56, %v1112_v17 }
 0x116   : > { %1180 = vst [vmem:[%s1843_s12 + $0x20] sm:$0xff] %v1148_v18  ;;  %v1149_v21 = vadd.f32 %v1837_v56, %v1110_v19  ;;  %v1507_v22 = vpop.f32.mrb[8].mxu0 }
 0x117   : > { %1183 = vst [vmem:[%s1843_s12 + $0x38] sm:$0xff] %v1151_v20  ;;  %v1539_v23 = vadd.f32 %v1507_v22, %v1439_v44  ;;  %v971_v24 = vpop.f32.mrb[9].mxu0 }
 0x118   : > { %1181 = vst [vmem:[%s1843_s12 + $0x28] sm:$0xff] %v1149_v21  ;;  %v1540_v25 = vadd.f32 %v971_v24, %v466_v45  ;;  %v1508_v26 = vpop.f32.mrb[10].mxu0 }
 0x119   : > { %v1115_v27 = vmul.f32 %v1539_v23, %v1832_v53  ;;  %v1541_v28 = vadd.f32 %v1508_v26, %v1440_v46  ;;  %v974_v29 = vpop.f32.mrb[11].mxu0 }
 0x11a   : > { %v1113_v30 = vmul.f32 %v1540_v25, %v1832_v53  ;;  %v1542_v31 = vadd.f32 %v974_v29, %v469_v47 }
 0x11b   : > { %v1154_v32 = vadd.f32 %v1837_v56, %v1115_v27  ;;  %v1116_v33 = vmul.f32 %v1541_v28, %v1832_v53 }
 0x11c   : > { %v1152_v34 = vadd.f32 %v1837_v56, %v1113_v30  ;;  %v1114_v35 = vmul.f32 %v1542_v31, %v1832_v53 }
 0x11d   : > { %1186 = vst [vmem:[%s1843_s12 + $0x50] sm:$0xff] %v1154_v32  ;;  %v1155_v36 = vadd.f32 %v1837_v56, %v1116_v33 }
 0x11e   : > { %1184 = vst [vmem:[%s1843_s12 + $0x40] sm:$0xff] %v1152_v34  ;;  %v1153_v37 = vadd.f32 %v1837_v56, %v1114_v35  ;;  %v1511_v38 = vpop.f32.mrb[12].mxu0 }
 0x11f   : > { %1187 = vst [vmem:[%s1843_s12 + $0x58] sm:$0xff] %v1155_v36  ;;  %v1543_v39 = vadd.f32 %v1511_v38, %v1821_v48  ;;  %v987_v40 = vpop.f32.mrb[13].mxu0 }
 0x120   : > { %1185 = vst [vmem:[%s1843_s12 + $0x48] sm:$0xff] %v1153_v37  ;;  %v1544_v41 = vadd.f32 %v987_v40, %v1823_v49  ;;  %v1512_v42 = vpop.f32.mrb[14].mxu0 }
 0x121   : > { %v1119_v43 = vmul.f32 %v1543_v39, %v1832_v53  ;;  %v1545_v44 = vadd.f32 %v1512_v42, %v1825_v50  ;;  %v990_v45 = vpop.f32.mrb[15].mxu0 }
 0x122   : > { %v1117_v46 = vmul.f32 %v1544_v41, %v1832_v53  ;;  %v1546_v47 = vadd.f32 %v990_v45, %v1827_v51 }
 0x123   : > { %v1158_v52 = vadd.f32 %v1837_v56, %v1119_v43  ;;  %v1120_v48 = vmul.f32 %v1545_v44, %v1832_v53 }
 0x124   : > { %v1156_v54 = vadd.f32 %v1837_v56, %v1117_v46  ;;  %v1118_v49 = vmul.f32 %v1546_v47, %v1832_v53 }
 0x125   : > { %1190 = vst [vmem:[%s1843_s12 + $0x70] sm:$0xff] %v1158_v52  ;;  %v1159_v55 = vadd.f32 %v1837_v56, %v1120_v48 }
 0x126   : > { %1188 = vst [vmem:[%s1843_s12 + $0x60] sm:$0xff] %v1156_v54  ;;  %v1157_v50 = vadd.f32 %v1837_v56, %v1118_v49  ;;  %v1481_v57 = vpop.f32.mrb[16].mxu1  ;;  %v1515_v58 = vpop.f32.mrb[16].mxu0 }
 0x127   : > { %1191 = vst [vmem:[%s1843_s12 + $0x78] sm:$0xff] %v1159_v55  ;;  %v1547_v59 = vadd.f32 %v1515_v58, %v1481_v57  ;;  %v673_v60 = vpop.f32.mrb[17].mxu1  ;;  %v1003_v51 = vpop.f32.mrb[17].mxu0 }
 0x128   : > { %1189 = vst [vmem:[%s1843_s12 + $0x68] sm:$0xff] %v1157_v50  ;;  %v1548_v61 = vadd.f32 %v1003_v51, %v673_v60  ;;  %v1482_v62 = vpop.f32.mrb[18].mxu1  ;;  %v1516_v63 = vpop.f32.mrb[18].mxu0 }
 0x129   : > { %v1123_v0 = vmul.f32 %v1547_v59, %v1832_v53  ;;  %v1549_v1 = vadd.f32 %v1516_v63, %v1482_v62  ;;  %v676_v2 = vpop.f32.mrb[19].mxu1  ;;  %v1006_v3 = vpop.f32.mrb[19].mxu0 }
 0x12a   : > { %v1121_v4 = vmul.f32 %v1548_v61, %v1832_v53  ;;  %v1550_v5 = vadd.f32 %v1006_v3, %v676_v2 }
 0x12b   : > { %v1162_v6 = vadd.f32 %v1837_v56, %v1123_v0  ;;  %v1124_v7 = vmul.f32 %v1549_v1, %v1832_v53 }
 0x12c   : > { %v1160_v8 = vadd.f32 %v1837_v56, %v1121_v4  ;;  %v1122_v9 = vmul.f32 %v1550_v5, %v1832_v53 }
 0x12d   : > { %1194 = vst [vmem:[%s1843_s12 + $0x90] sm:$0xff] %v1162_v6  ;;  %v1163_v10 = vadd.f32 %v1837_v56, %v1124_v7 }
 0x12e   : > { %1192 = vst [vmem:[%s1843_s12 + $0x80] sm:$0xff] %v1160_v8  ;;  %v1161_v11 = vadd.f32 %v1837_v56, %v1122_v9  ;;  %v1485_v12 = vpop.f32.mrb[20].mxu1  ;;  %v1519_v13 = vpop.f32.mrb[20].mxu0 }
 0x12f   : > { %1195 = vst [vmem:[%s1843_s12 + $0x98] sm:$0xff] %v1163_v10  ;;  %v1551_v14 = vadd.f32 %v1519_v13, %v1485_v12  ;;  %v689_v15 = vpop.f32.mrb[21].mxu1  ;;  %v1019_v16 = vpop.f32.mrb[21].mxu0 }
 0x130   : > { %1193 = vst [vmem:[%s1843_s12 + $0x88] sm:$0xff] %v1161_v11  ;;  %v1552_v17 = vadd.f32 %v1019_v16, %v689_v15  ;;  %v1486_v18 = vpop.f32.mrb[22].mxu1  ;;  %v1520_v19 = vpop.f32.mrb[22].mxu0 }
 0x131   : > { %v1127_v20 = vmul.f32 %v1551_v14, %v1832_v53  ;;  %v1553_v21 = vadd.f32 %v1520_v19, %v1486_v18  ;;  %v692_v22 = vpop.f32.mrb[23].mxu1  ;;  %v1022_v23 = vpop.f32.mrb[23].mxu0 }
 0x132   : > { %v1125_v24 = vmul.f32 %v1552_v17, %v1832_v53  ;;  %v1554_v25 = vadd.f32 %v1022_v23, %v692_v22 }
 0x133   : > { %v1166_v26 = vadd.f32 %v1837_v56, %v1127_v20  ;;  %v1128_v27 = vmul.f32 %v1553_v21, %v1832_v53 }
 0x134   : > { %v1164_v28 = vadd.f32 %v1837_v56, %v1125_v24  ;;  %v1126_v29 = vmul.f32 %v1554_v25, %v1832_v53 }
 0x135   : > { %1198 = vst [vmem:[%s1843_s12 + $0xb0] sm:$0xff] %v1166_v26  ;;  %v1167_v30 = vadd.f32 %v1837_v56, %v1128_v27 }
 0x136   : > { %1196 = vst [vmem:[%s1843_s12 + $0xa0] sm:$0xff] %v1164_v28  ;;  %v1165_v31 = vadd.f32 %v1837_v56, %v1126_v29  ;;  %v1489_v32 = vpop.f32.mrb[24].mxu1  ;;  %v1523_v33 = vpop.f32.mrb[24].mxu0 }
 0x137   : > { %1199 = vst [vmem:[%s1843_s12 + $0xb8] sm:$0xff] %v1167_v30  ;;  %v1555_v34 = vadd.f32 %v1523_v33, %v1489_v32  ;;  %v705_v35 = vpop.f32.mrb[25].mxu1  ;;  %v1035_v36 = vpop.f32.mrb[25].mxu0 }
 0x138   : > { %1197 = vst [vmem:[%s1843_s12 + $0xa8] sm:$0xff] %v1165_v31  ;;  %v1556_v37 = vadd.f32 %v1035_v36, %v705_v35  ;;  %v1490_v38 = vpop.f32.mrb[26].mxu1  ;;  %v1524_v39 = vpop.f32.mrb[26].mxu0 }
 0x139   : > { %v1131_v40 = vmul.f32 %v1555_v34, %v1832_v53  ;;  %v1557_v41 = vadd.f32 %v1524_v39, %v1490_v38  ;;  %v708_v42 = vpop.f32.mrb[27].mxu1  ;;  %v1038_v43 = vpop.f32.mrb[27].mxu0 }
 0x13a   : > { %v1129_v44 = vmul.f32 %v1556_v37, %v1832_v53  ;;  %v1558_v45 = vadd.f32 %v1038_v43, %v708_v42 }
 0x13b   : > { %v1170_v46 = vadd.f32 %v1837_v56, %v1131_v40  ;;  %v1132_v47 = vmul.f32 %v1557_v41, %v1832_v53 }
 0x13c   : > { %v1168_v52 = vadd.f32 %v1837_v56, %v1129_v44  ;;  %v1130_v48 = vmul.f32 %v1558_v45, %v1832_v53 }
 0x13d   : > { %1202 = vst [vmem:[%s1843_s12 + $0xd0] sm:$0xff] %v1170_v46  ;;  %v1171_v54 = vadd.f32 %v1837_v56, %v1132_v47 }
 0x13e   : > { %1200 = vst [vmem:[%s1843_s12 + $0xc0] sm:$0xff] %v1168_v52  ;;  %v1169_v49 = vadd.f32 %v1837_v56, %v1130_v48  ;;  %v1493_v55 = vpop.f32.mrb[28].mxu1  ;;  %v1527_v50 = vpop.f32.mrb[28].mxu0 }
 0x13f   : > { %1203 = vst [vmem:[%s1843_s12 + $0xd8] sm:$0xff] %v1171_v54  ;;  %v1559_v57 = vadd.f32 %v1527_v50, %v1493_v55  ;;  %v721_v58 = vpop.f32.mrb[29].mxu1  ;;  %v1051_v59 = vpop.f32.mrb[29].mxu0 }
 0x140   : > { %1201 = vst [vmem:[%s1843_s12 + $0xc8] sm:$0xff] %v1169_v49  ;;  %v1560_v60 = vadd.f32 %v1051_v59, %v721_v58  ;;  %v1494_v51 = vpop.f32.mrb[30].mxu1  ;;  %v1528_v61 = vpop.f32.mrb[30].mxu0 }
 0x141   : > { %v1135_v62 = vmul.f32 %v1559_v57, %v1832_v53  ;;  %v1561_v63 = vadd.f32 %v1528_v61, %v1494_v51  ;;  %v724_v0 = vpop.f32.mrb[31].mxu1  ;;  %v1054_v1 = vpop.f32.mrb[31].mxu0 }
 0x142   : > { %v1133_v2 = vmul.f32 %v1560_v60, %v1832_v53  ;;  %v1562_v3 = vadd.f32 %v1054_v1, %v724_v0 }
 0x143   : > { %v1174_v4 = vadd.f32 %v1837_v56, %v1135_v62  ;;  %v1136_v5 = vmul.f32 %v1561_v63, %v1832_v53 }
 0x144   : > { %v1172_v6 = vadd.f32 %v1837_v56, %v1133_v2  ;;  %v1134_v7 = vmul.f32 %v1562_v3, %v1832_v53 }
 0x145   : > { %1206 = vst [vmem:[%s1843_s12 + $0xf0] sm:$0xff] %v1174_v4  ;;  %v1175_v8 = vadd.f32 %v1837_v56, %v1136_v5 }
 0x146   : > { %1204 = vst [vmem:[%s1843_s12 + $0xe0] sm:$0xff] %v1172_v6  ;;  %v1173_v9 = vadd.f32 %v1837_v56, %v1134_v7 }
 0x147   : > { %1207 = vst [vmem:[%s1843_s12 + $0xf8] sm:$0xff] %v1175_v8 }
 0x148   : > { %1205 = vst [vmem:[%s1843_s12 + $0xe8] sm:$0xff] %v1173_v9 }
 0x149 PF: > { %s14_s17 = sadd.s32 1, %s1677_s17   ;;  %s1958_s15 = smov %s1673_s16 }
 0x14a   : > { %p11_p6 = scmp.ge.s32.totalorder %s14_s17, 4   ;;  %s1959_s16 = smov %s1961_s18 }
 0x14c   :  { %13 = sbr.rel (!%p11_p6) target bundleno = 2 (0x2), region = 68 }

// kernel: conv_bn.2
= control target key start
LH: loop header
LB: loop body
LE: loop exit
PB: predicated region body
PF: predicated region fallthrough
CT: control target
= control target key end

     0   :  { %s2000_s15 = smov 0   ;;  %s2002_s16 = smov 0   ;;  %s2397_s0 = inlined_call_operand.vmem [shape: bf16[576,16], index: 0, kind: input, shape index: {}]   ;;  %s2398_s1 = inlined_call_operand.vmem [shape: bf16[3,16,128], index: 1, kind: input, shape index: {}]   ;;  %s2399_s2 = inlined_call_operand.vmem [shape: f32[1,8,256], index: 2, kind: input, shape index: {}]   ;;  %s2400_s3 = inlined_call_operand.vmem [shape: f32[2,1,8,128], index: 3, kind: output, shape index: {0}]   ;;  %s2401_s4 = inlined_call_operand.vmem [shape: f32[2,1,8,128], index: 4, kind: output, shape index: {1}]  }
   0x1   :  { %s2004_s17 = smov 0  }
   0x2 LB: > { %s27_s18 = sadd.s32 1, %s1969_s16  ;;  %p1446_p0 = scmp.ge.s32.totalorder %s1973_s17, 1  ;;  %s1973_s17 = sphi %s2004_s17, %s15_s17   ;;  %s1969_s16 = sphi %s2002_s16, %s2419_s16   ;;  %s1965_s15 = sphi %s2000_s15, %s2418_s15  }
   0x3   : > { %p29_p1 = scmp.ge.s32.totalorder %s27_s18, 2  ;;  %p196_p2 = scmp.lt.s32.totalorder %s1973_s17, 3 }
   0x5   : > { %s2421_s18 = smov (%p29_p1, %s27_s18), 0  ;;  %p197_p3 = pnand %p1446_p0, %p196_p2 }
   0x6   : > { %v1915_v0 = vld [vmem:[%s2398_s1] sm:$0xff] (!%p197_p3)   ;;  %s238_s21 = smul.u32 (!%p197_p3), 36, %s1965_s15  ;;  %v1925_v1 = vld [vmem:[%s2398_s1 + $0x10] sm:$0xff] (!%p197_p3)   ;;  %v1933_v2 = vld [vmem:[%s2398_s1 + $0x8] sm:$0xff] (!%p197_p3)   ;;  %vm390_vm0 = vcmask (!%p197_p3), 130048   ;;  %p250_p5 = scmp.lt.s32.totalorder (!%p197_p3), %s1965_s15, 1 }
   0x7   : > { %200 = sbr.rel (%p197_p3) target bundleno = 614 (0x266), region = 32  ;;  %1695 = vmatprep.subr.bf16.mxu0 (!%p197_p3), %v1915_v0  ;;  %1661 = vmatprep.subr.bf16.mxu1 (!%p197_p3), %v1933_v2  ;;  %v2119_v40 = vld [vmem:[%s2399_s2 + $0x8] sm:$0xff] (!%p197_p3) }
   0x8   : > { %p239_p4 = scmp.lt.s32.totalorder (!%p197_p3), %s238_s21, 71  ;;  %1696 = vmatpush3.bf16.msra.mxu0 (!%p197_p3), %v1915_v0  ;;  %1662 = vmatpush3.bf16.msra.mxu1 (!%p197_p3), %v1933_v2 }
   0x9   : > { %1729 = vmatprep.subr.bf16.mxu0 (!%p197_p3), %v1925_v1 }
   0xe   : > { %s2423_s21 = smov (!%p239_p4, %s238_s21), 71  ;;  %s2425_s15 = smov (!%p250_p5, %s1965_s15), 1 }
   0xf   : > { %s1447_s26 = sshll.u32 %s2423_s21, 2  ;;  %s1448_s8 = sshll.u32 %s2425_s15, 3 }
  0x10   : > { %s2033_s29 = scalar_lea.vmem %s2397_s0, %s1447_s26  ;;  %s256_s11 = scalar_lea.vmem %s2400_s3, %s1448_s8 }
  0x11   : > { %v1916_v3 = vld [vmem:[%s2033_s29] sm:$0xff]   ;;  %v1917_v4 = vld [vmem:[%s2033_s29 + $0x8] sm:$0xff]   ;;  %v1918_v5 = vld [vmem:[%s2033_s29 + $0x10] sm:$0xff]   ;;  %s263_s14 = scalar_lea.vmem %s2401_s4, %s1448_s8 }
  0x12   : > { %1697 = vmatprep.mubr.msk.bf16.mxu0 %vm390_vm0, %v1916_v3  ;;  %1663 = vmatprep.mubr.msk.bf16.mxu1 %vm390_vm0, %v1917_v4  ;;  %v1919_v6 = vld [vmem:[%s2033_s29 + $0x18] sm:$0xff]   ;;  %v1920_v7 = vld [vmem:[%s2033_s29 + $0x20] sm:$0xff]   ;;  %v1921_v8 = vld [vmem:[%s2033_s29 + $0x28] sm:$0xff]  }
  0x13   : > { %1698 = vmatmul.mubr.msk.bf16.vlgmr.msra.gmra.mrb[0].mxu0 %vm390_vm0, %v1917_v4  ;;  %1664 = vmatmul.mubr.msk.bf16.vlgmr.msra.gmra.mrb[0].mxu1 %vm390_vm0, %v1918_v5  ;;  %v1922_v9 = vld [vmem:[%s2033_s29 + $0x30] sm:$0xff]   ;;  %v1923_v10 = vld [vmem:[%s2033_s29 + $0x38] sm:$0xff]   ;;  %v1924_v11 = vld [vmem:[%s2033_s29 + $0x40] sm:$0xff]  }
  0x14   : > { %1701 = vmatprep.mubr.msk.bf16.mxu0 %vm390_vm0, %v1918_v5  ;;  %1730 = vmatpush3.bf16.msra.mxu0 %v1925_v1  ;;  %v1926_v12 = vld [vmem:[%s2033_s29 + $0x48] sm:$0xff]   ;;  %v1927_v13 = vld [vmem:[%s2033_s29 + $0x50] sm:$0xff]   ;;  %v1928_v14 = vld [vmem:[%s2033_s29 + $0x58] sm:$0xff]  }
  0x15   : > { %1667 = vmatprep.mubr.msk.bf16.mxu1 %vm390_vm0, %v1919_v6  ;;  %v1929_v15 = vld [vmem:[%s2033_s29 + $0x60] sm:$0xff]   ;;  %v1930_v16 = vld [vmem:[%s2033_s29 + $0x68] sm:$0xff]   ;;  %v1931_v17 = vld [vmem:[%s2033_s29 + $0x70] sm:$0xff]  }
  0x16   : > { %v1932_v18 = vld [vmem:[%s2033_s29 + $0x78] sm:$0xff]   ;;  %v1934_v19 = vld [vmem:[%s2033_s29 + $0x10] sm:$0xff]   ;;  %v1949_v20 = vld [vmem:[%s2033_s29 + $0x80] sm:$0xff]  }
  0x17   : > { %v1935_v21 = vld [vmem:[%s2033_s29 + $0x18] sm:$0xff]   ;;  %v1936_v22 = vld [vmem:[%s2033_s29 + $0x20] sm:$0xff]   ;;  %v1937_v23 = vld [vmem:[%s2033_s29 + $0x28] sm:$0xff]  }
  0x18   : > { %v1938_v24 = vld [vmem:[%s2033_s29 + $0x30] sm:$0xff]   ;;  %v1939_v25 = vld [vmem:[%s2033_s29 + $0x38] sm:$0xff]   ;;  %v1940_v26 = vld [vmem:[%s2033_s29 + $0x40] sm:$0xff]  }
  0x19   : > { %v1941_v27 = vld [vmem:[%s2033_s29 + $0x48] sm:$0xff]   ;;  %v1942_v28 = vld [vmem:[%s2033_s29 + $0x50] sm:$0xff]   ;;  %v1943_v29 = vld [vmem:[%s2033_s29 + $0x58] sm:$0xff]  }
  0x1a   : > { %v1944_v30 = vld [vmem:[%s2033_s29 + $0x60] sm:$0xff]   ;;  %v1945_v31 = vld [vmem:[%s2033_s29 + $0x68] sm:$0xff]   ;;  %v1946_v32 = vld [vmem:[%s2033_s29 + $0x70] sm:$0xff]  }
  0x1b   : > { %1702 = vmatmul.mubr.msk.bf16.gmra.mrb[4].mxu0 %vm390_vm0, %v1919_v6  ;;  %1668 = vmatmul.mubr.msk.bf16.gmra.mrb[4].mxu1 %vm390_vm0, %v1920_v7  ;;  %v1947_v33 = vld [vmem:[%s2033_s29 + $0x78] sm:$0xff]   ;;  %v1948_v34 = vld [vmem:[%s2033_s29 + $0x80] sm:$0xff]   ;;  %v1950_v35 = vld [vmem:[%s2033_s29 + $0x88] sm:$0xff]  }
  0x1c   : > { %1705 = vmatprep.mubr.msk.bf16.mxu0 %vm390_vm0, %v1920_v7  ;;  %1671 = vmatprep.mubr.msk.bf16.mxu1 %vm390_vm0, %v1921_v8 }
  0x23   : > { %1706 = vmatmul.mubr.msk.bf16.gmra.mrb[8].mxu0 %vm390_vm0, %v1921_v8  ;;  %1672 = vmatmul.mubr.msk.bf16.gmra.mrb[8].mxu1 %vm390_vm0, %v1922_v9 }
  0x24   : > { %1709 = vmatprep.mubr.msk.bf16.mxu0 %vm390_vm0, %v1922_v9  ;;  %1675 = vmatprep.mubr.msk.bf16.mxu1 %vm390_vm0, %v1923_v10 }
  0x2b   : > { %1710 = vmatmul.mubr.msk.bf16.gmra.mrb[12].mxu0 %vm390_vm0, %v1923_v10  ;;  %1676 = vmatmul.mubr.msk.bf16.gmra.mrb[12].mxu1 %vm390_vm0, %v1924_v11 }
  0x2c   : > { %1713 = vmatprep.mubr.msk.bf16.mxu0 %vm390_vm0, %v1924_v11  ;;  %1679 = vmatprep.mubr.msk.bf16.mxu1 %vm390_vm0, %v1926_v12 }
  0x33   : > { %1714 = vmatmul.mubr.msk.bf16.gmra.mrb[16].mxu0 %vm390_vm0, %v1926_v12  ;;  %1680 = vmatmul.mubr.msk.bf16.gmra.mrb[16].mxu1 %vm390_vm0, %v1927_v13 }
  0x34   : > { %1717 = vmatprep.mubr.msk.bf16.mxu0 %vm390_vm0, %v1927_v13  ;;  %1683 = vmatprep.mubr.msk.bf16.mxu1 %vm390_vm0, %v1928_v14 }
  0x3b   : > { %1718 = vmatmul.mubr.msk.bf16.gmra.mrb[20].mxu0 %vm390_vm0, %v1928_v14  ;;  %1684 = vmatmul.mubr.msk.bf16.gmra.mrb[20].mxu1 %vm390_vm0, %v1929_v15 }
  0x3c   : > { %1721 = vmatprep.mubr.msk.bf16.mxu0 %vm390_vm0, %v1929_v15  ;;  %1687 = vmatprep.mubr.msk.bf16.mxu1 %vm390_vm0, %v1930_v16 }
  0x43   : > { %1722 = vmatmul.mubr.msk.bf16.gmra.mrb[24].mxu0 %vm390_vm0, %v1930_v16  ;;  %1688 = vmatmul.mubr.msk.bf16.gmra.mrb[24].mxu1 %vm390_vm0, %v1931_v17 }
  0x44   : > { %1725 = vmatprep.mubr.msk.bf16.mxu0 %vm390_vm0, %v1931_v17  ;;  %1691 = vmatprep.mubr.msk.bf16.mxu1 %vm390_vm0, %v1932_v18 }
  0x4b   : > { %1726 = vmatmul.mubr.msk.bf16.gmra.mrb[28].mxu0 %vm390_vm0, %v1932_v18  ;;  %1692 = vmatmul.mubr.msk.bf16.gmra.mrb[28].mxu1 %vm390_vm0, %v1949_v20 }
  0x4c   : > { %1731 = vmatprep.mubr.msk.bf16.mxu0 %vm390_vm0, %v1934_v19  ;;  %1203 = vmatprep.mubr.f32.mxu1 %v2119_v40 }
  0x53   : > { %1732 = vmatmul.mubr.msk.bf16.vlgmr.msra.gmra.mrb[0].mxu0 %vm390_vm0, %v1935_v21 }
  0x54   : > { %1735 = vmatprep.mubr.msk.bf16.mxu0 %vm390_vm0, %v1936_v22 }
  0x5b   : > { %1736 = vmatmul.mubr.msk.bf16.gmra.mrb[4].mxu0 %vm390_vm0, %v1937_v23 }
  0x5c   : > { %1739 = vmatprep.mubr.msk.bf16.mxu0 %vm390_vm0, %v1938_v24 }
  0x63   : > { %1740 = vmatmul.mubr.msk.bf16.gmra.mrb[8].mxu0 %vm390_vm0, %v1939_v25 }
  0x64   : > { %1743 = vmatprep.mubr.msk.bf16.mxu0 %vm390_vm0, %v1940_v26 }
  0x6b   : > { %1744 = vmatmul.mubr.msk.bf16.gmra.mrb[12].mxu0 %vm390_vm0, %v1941_v27 }
  0x6c   : > { %1747 = vmatprep.mubr.msk.bf16.mxu0 %vm390_vm0, %v1942_v28 }
  0x73   : > { %1748 = vmatmul.mubr.msk.bf16.gmra.mrb[16].mxu0 %vm390_vm0, %v1943_v29 }
  0x74   : > { %1751 = vmatprep.mubr.msk.bf16.mxu0 %vm390_vm0, %v1944_v30 }
  0x7b   : > { %1752 = vmatmul.mubr.msk.bf16.gmra.mrb[20].mxu0 %vm390_vm0, %v1945_v31 }
  0x7c   : > { %1755 = vmatprep.mubr.msk.bf16.mxu0 %vm390_vm0, %v1946_v32 }
  0x83   : > { %1756 = vmatmul.mubr.msk.bf16.gmra.mrb[24].mxu0 %vm390_vm0, %v1947_v33 }
  0x84   : > { %1759 = vmatprep.mubr.msk.bf16.mxu0 %vm390_vm0, %v1948_v34 }
  0x8b   : > { %1760 = vmatmul.mubr.msk.bf16.gmra.mrb[28].mxu0 %vm390_vm0, %v1950_v35 }
  0xe6   : > { %v1665_v36 = vpop.f32.mrb[0].mxu1 }
  0xe7   : > { %v473_v37 = vpop.f32.mrb[1].mxu1 }
  0xe8   : > { %v1666_v38 = vpop.f32.mrb[2].mxu1 }
  0xe9   : > { %v476_v39 = vpop.f32.mrb[3].mxu1 }
  0xee   : > { %v1669_v41 = vpop.f32.mrb[4].mxu1 }
  0xef   : > { %v489_v42 = vpop.f32.mrb[5].mxu1 }
  0xf0   : > { %v1670_v43 = vpop.f32.mrb[6].mxu1 }
  0xf1   : > { %v492_v44 = vpop.f32.mrb[7].mxu1 }
  0xf6   : > { %v1673_v45 = vpop.f32.mrb[8].mxu1 }
  0xf7   : > { %v505_v46 = vpop.f32.mrb[9].mxu1 }
  0xf8   : > { %v1674_v47 = vpop.f32.mrb[10].mxu1 }
  0xf9   : > { %v508_v48 = vpop.f32.mrb[11].mxu1 }
  0xfe   : > { %v2122_v49 = vpop.f32.mrb[12].mxu1 }
  0xff   : > { %v2124_v50 = vpop.f32.mrb[13].mxu1 }
 0x100   : > { %v2126_v51 = vpop.f32.mrb[14].mxu1 }
 0x101   : > { %v2128_v52 = vpop.f32.mrb[15].mxu1 }
 0x106   : > { %v2130_v53 = vpop.f32.mrb[16].mxu1 }
 0x107   : > { %v2132_v54 = vpop.f32.mrb[17].mxu1 }
 0x108   : > { %v2134_v55 = vpop.f32.mrb[18].mxu1 }
 0x109   : > { %v2136_v56 = vpop.f32.mrb[19].mxu1 }
 0x10e   : > { %v2138_v57 = vpop.f32.mrb[20].mxu1 }
 0x10f   : > { %v2140_v58 = vpop.f32.mrb[21].mxu1 }
 0x110   : > { %v2142_v59 = vpop.f32.mrb[22].mxu1 }
 0x111   : > { %v2144_v60 = vpop.f32.mrb[23].mxu1 }
 0x116   : > { %v2146_v61 = vpop.f32.mrb[24].mxu1 }
 0x117   : > { %v2148_v62 = vpop.f32.mrb[25].mxu1 }
 0x118   : > { %v2150_v63 = vpop.f32.mrb[26].mxu1 }
 0x119   : > { %v2152_v0 = vpop.f32.mrb[27].mxu1 }
 0x11e   : > { %v2154_v1 = vpop.f32.mrb[28].mxu1 }
 0x11f   : > { %v2156_v2 = vpop.f32.mrb[29].mxu1 }
 0x120   : > { %v2158_v3 = vpop.f32.mrb[30].mxu1 }
 0x121   : > { %v2160_v4 = vpop.f32.mrb[31].mxu1 }
 0x126   : > { %v1733_v5 = vpop.f32.mrb[0].mxu0 }
 0x127   : > { %v2162_v6 = vadd.f32 %v1733_v5, %v1665_v36  ;;  %v978_v7 = vpop.f32.mrb[1].mxu0 }
 0x128   : > { %v2164_v8 = vadd.f32 %v978_v7, %v473_v37  ;;  %v1734_v9 = vpop.f32.mrb[2].mxu0 }
 0x129   : > { %v2166_v10 = vadd.f32 %v1734_v9, %v1666_v38  ;;  %v981_v11 = vpop.f32.mrb[3].mxu0  ;;  %v2172_v13 = vmul.f32 %v2162_v6, %v2162_v6 }
 0x12a   : > { %v2168_v12 = vadd.f32 %v981_v11, %v476_v39  ;;  %v2182_v16 = vmul.f32 %v2164_v8, %v2164_v8 }
 0x12b   : > { %v2178_v15 = vmul.f32 %v2166_v10, %v2166_v10 }
 0x12c   : > { %v1765_v17 = vpack.c.bf16 %v2168_v12, %v2164_v8  ;;  %v2188_v18 = vmul.f32 %v2168_v12, %v2168_v12 }
 0x12e   : > { %v1737_v21 = vpop.f32.mrb[4].mxu0 }
 0x12f   : > { %v2194_v22 = vadd.f32 %v1737_v21, %v1669_v41  ;;  %v994_v23 = vpop.f32.mrb[5].mxu0 }
 0x130   : > { %v2196_v24 = vadd.f32 %v994_v23, %v489_v42  ;;  %v1738_v25 = vpop.f32.mrb[6].mxu0 }
 0x131   : > { %v2198_v26 = vadd.f32 %v1738_v25, %v1670_v43  ;;  %v997_v27 = vpop.f32.mrb[7].mxu0  ;;  %v2204_v29 = vmul.f32 %v2194_v22, %v2194_v22 }
 0x132   : > { %v2200_v28 = vadd.f32 %v997_v27, %v492_v44  ;;  %v2214_v32 = vmul.f32 %v2196_v24, %v2196_v24 }
 0x133   : > { %v2210_v31 = vmul.f32 %v2198_v26, %v2198_v26 }
 0x134   : > { %v2220_v34 = vmul.f32 %v2200_v28, %v2200_v28 }
 0x136   : > { %v1741_v37 = vpop.f32.mrb[8].mxu0 }
 0x137   : > { %v2226_v38 = vadd.f32 %v1741_v37, %v1673_v45  ;;  %v1010_v39 = vpop.f32.mrb[9].mxu0 }
 0x138   : > { %v2228_v41 = vadd.f32 %v1010_v39, %v505_v46  ;;  %v1742_v42 = vpop.f32.mrb[10].mxu0 }
 0x139   : > { %v2230_v43 = vadd.f32 %v1742_v42, %v1674_v47  ;;  %v1013_v44 = vpop.f32.mrb[11].mxu0  ;;  %v2236_v7 = vmul.f32 %v2226_v38, %v2226_v38 }
 0x13a   : > { %v2232_v5 = vadd.f32 %v1013_v44, %v508_v48  ;;  %v2246_v46 = vmul.f32 %v2228_v41, %v2228_v41 }
 0x13b   : > { %v2242_v45 = vmul.f32 %v2230_v43, %v2230_v43 }
 0x13c   : > { %v2252_v48 = vmul.f32 %v2232_v5, %v2232_v5 }
 0x13e   : > { %v1745_v23 = vpop.f32.mrb[12].mxu0 }
 0x13f   : > { %v2259_v25 = vadd.f32 %v1745_v23, %v2122_v49  ;;  %v1026_v27 = vpop.f32.mrb[13].mxu0 }
 0x140   : > { %v2262_v37 = vadd.f32 %v1026_v27, %v2124_v50  ;;  %v1746_v39 = vpop.f32.mrb[14].mxu0 }
 0x141   : > { %v2265_v42 = vadd.f32 %v1746_v39, %v2126_v51  ;;  %v1029_v44 = vpop.f32.mrb[15].mxu0  ;;  %v2272_v11 = vmul.f32 %v2259_v25, %v2259_v25 }
 0x142   : > { %v2268_v35 = vadd.f32 %v1029_v44, %v2128_v52  ;;  %v2282_v50 = vmul.f32 %v2262_v37, %v2262_v37 }
 0x143   : > { %v2278_v23 = vmul.f32 %v2265_v42, %v2265_v42 }
 0x144   : > { %v2288_v52 = vmul.f32 %v2268_v35, %v2268_v35 }
 0x146   : > { %v1749_v44 = vpop.f32.mrb[16].mxu0 }
 0x147   : > { %v1843_v21 = vadd.f32 %v1749_v44, %v2130_v53  ;;  %v1042_v36 = vpop.f32.mrb[17].mxu0 }
 0x148   : > { %v1844_v19 = vadd.f32 %v1042_v36, %v2132_v54  ;;  %v1750_v20 = vpop.f32.mrb[18].mxu0 }
 0x149   : > { %v1845_v49 = vadd.f32 %v1750_v20, %v2134_v55  ;;  %v1045_v51 = vpop.f32.mrb[19].mxu0  ;;  %v2298_v47 = vmul.f32 %v1843_v21, %v1843_v21 }
 0x14a   : > { %v1846_v9 = vadd.f32 %v1045_v51, %v2136_v56  ;;  %v2302_v27 = vmul.f32 %v1844_v19, %v1844_v19 }
 0x14b   : > { %v1767_v30 = vpack.c.bf16 %v1845_v49, %v1843_v21  ;;  %v2300_v33 = vmul.f32 %v1845_v49, %v1845_v49 }
 0x14c   : > { %v1763_v39 = vpack.c.bf16 %v1846_v9, %v1844_v19  ;;  %v2304_v14 = vmul.f32 %v1846_v9, %v1846_v9 }
 0x14e   : > { %v1753_v54 = vpop.f32.mrb[20].mxu0  ;;  %1764 = vmatprep.subr.bf16.mxu1 %v1763_v39  ;;  %v1795_v55 = vpack.c.bf16 %v2304_v14, %v2302_v27  ;;  %v2412_v14 = vpack.c.bf16 %v2220_v34, %v2214_v32 }
 0x14f   : > { %v1847_v56 = vadd.f32 %v1753_v54, %v2138_v57  ;;  %v1058_v20 = vpop.f32.mrb[21].mxu0  ;;  %1766 = vmatpush3.bf16.msra.mxu1 %v1765_v17  ;;  %v2402_v57 = vpack.c.bf16 %v2166_v10, %v2162_v6 }
 0x150   : > { %v1848_v36 = vadd.f32 %v1058_v20, %v2140_v58  ;;  %v1754_v19 = vpop.f32.mrb[22].mxu0  ;;  %1768 = vmatprep.subr.bf16.mxu1 %v1767_v30 }
 0x151   : > { %v1849_v9 = vadd.f32 %v1754_v19, %v2142_v59  ;;  %v1061_v21 = vpop.f32.mrb[23].mxu0  ;;  %v1232_v51 = vmul.f32 %v1847_v56, %v1847_v56 }
 0x152   : > { %v1850_v49 = vadd.f32 %v1061_v21, %v2144_v60  ;;  %v1230_v54 = vmul.f32 %v1848_v36, %v1848_v36  ;;  %v2403_v60 = vpack.c.bf16 %v2200_v28, %v2196_v24 }
 0x153   : > { %v1775_v39 = vpack.c.bf16 %v1849_v9, %v1847_v56  ;;  %v1233_v44 = vmul.f32 %v1849_v9, %v1849_v9  ;;  %1770 = vmatpush3.bf16.msra.mxu1 %v2402_v57 }
 0x154   : > { %v1771_v53 = vpack.c.bf16 %v1850_v49, %v1848_v36  ;;  %v1231_v8 = vmul.f32 %v1850_v49, %v1850_v49 }
 0x155   : > { %v1807_v12 = vpack.c.bf16 %v1233_v44, %v1232_v51 }
 0x156   : > { %v1757_v17 = vpop.f32.mrb[24].mxu0  ;;  %1772 = vmatprep.subr.bf16.mxu1 %v1771_v53  ;;  %v1803_v58 = vpack.c.bf16 %v1231_v8, %v1230_v54 }
 0x157   : > { %v1851_v30 = vadd.f32 %v1757_v17, %v2146_v61  ;;  %v1074_v59 = vpop.f32.mrb[25].mxu0  ;;  %1774 = vmatpush3.bf16.msra.mxu1 %v2403_v60  ;;  %v2404_v61 = vpack.c.bf16 %v2198_v26, %v2194_v22 }
 0x158   : > { %v1852_v56 = vadd.f32 %v1074_v59, %v2148_v62  ;;  %v1758_v20 = vpop.f32.mrb[26].mxu0  ;;  %1776 = vmatprep.subr.bf16.mxu1 %v1775_v39 }
 0x159   : > { %v1853_v6 = vadd.f32 %v1758_v20, %v2150_v63  ;;  %v1077_v10 = vpop.f32.mrb[27].mxu0  ;;  %v1236_v19 = vmul.f32 %v1851_v30, %v1851_v30 }
 0x15a   : > { %v1854_v36 = vadd.f32 %v1077_v10, %v2152_v0  ;;  %v1234_v21 = vmul.f32 %v1852_v56, %v1852_v56  ;;  %v2405_v0 = vpack.c.bf16 %v2232_v5, %v2228_v41 }
 0x15b   : > { %v1783_v9 = vpack.c.bf16 %v1853_v6, %v1851_v30  ;;  %v1237_v53 = vmul.f32 %v1853_v6, %v1853_v6  ;;  %1778 = vmatpush3.bf16.msra.mxu1 %v2404_v61 }
 0x15c   : > { %v1779_v49 = vpack.c.bf16 %v1854_v36, %v1852_v56  ;;  %v1235_v24 = vmul.f32 %v1854_v36, %v1854_v36  ;;  %v2407_v56 = vpack.c.bf16 %v2268_v35, %v2262_v37  ;;  %v2410_v35 = vpack.c.bf16 %v2300_v33, %v2298_v47 }
 0x15d   : > { %v1815_v28 = vpack.c.bf16 %v1237_v53, %v1236_v19 }
 0x15e   : > { %v1761_v51 = vpop.f32.mrb[28].mxu0  ;;  %1780 = vmatprep.subr.bf16.mxu1 %v1779_v49  ;;  %v1811_v62 = vpack.c.bf16 %v1235_v24, %v1234_v21 }
 0x15f   : > { %v1855_v39 = vadd.f32 %v1761_v51, %v2154_v1  ;;  %v1090_v63 = vpop.f32.mrb[29].mxu0  ;;  %1782 = vmatpush3.bf16.msra.mxu1 %v2405_v0  ;;  %v2406_v1 = vpack.c.bf16 %v2230_v43, %v2226_v38  ;;  %v2409_v38 = vpack.c.bf16 %v2188_v18, %v2182_v16  ;;  %v2411_v43 = vpack.c.bf16 %v2178_v15, %v2172_v13 }
 0x160   : > { %v1856_v44 = vadd.f32 %v1090_v63, %v2156_v2  ;;  %v1762_v57 = vpop.f32.mrb[30].mxu0  ;;  %1784 = vmatprep.subr.bf16.mxu1 %v1783_v9  ;;  %v2413_v16 = vpack.c.bf16 %v2210_v31, %v2204_v29  ;;  %v2415_v13 = vpack.c.bf16 %v2242_v45, %v2236_v7  ;;  %v2416_v15 = vpack.c.bf16 %v2288_v52, %v2282_v50 }
 0x161   : > { %v1857_v22 = vadd.f32 %v1762_v57, %v2158_v3  ;;  %v1093_v26 = vpop.f32.mrb[31].mxu0  ;;  %v1240_v8 = vmul.f32 %v1855_v39, %v1855_v39  ;;  %v2408_v3 = vpack.c.bf16 %v2265_v42, %v2259_v25  ;;  %v2417_v18 = vpack.c.bf16 %v2278_v23, %v2272_v11 }
 0x162   : > { %v1858_v54 = vadd.f32 %v1093_v26, %v2160_v4  ;;  %v1238_v59 = vmul.f32 %v1856_v44, %v1856_v44  ;;  %v1137_v4 = vld [vmem:[%s2399_s2] sm:$0xff] }
 0x163   : > { %v1791_v17 = vpack.c.bf16 %v1857_v22, %v1855_v39  ;;  %v1241_v30 = vmul.f32 %v1857_v22, %v1857_v22  ;;  %1786 = vmatpush3.bf16.msra.mxu1 %v2406_v1 }
 0x164   : > { %v1787_v60 = vpack.c.bf16 %v1858_v54, %v1856_v44  ;;  %v1239_v41 = vmul.f32 %v1858_v54, %v1858_v54 }
 0x165   : > { %v1823_v5 = vpack.c.bf16 %v1241_v30, %v1240_v8 }
 0x166   : > { %1788 = vmatprep.subr.bf16.mxu1 %v1787_v60  ;;  %v1819_v2 = vpack.c.bf16 %v1239_v41, %v1238_v59 }
 0x167   : > { %1790 = vmatpush3.bf16.msra.mxu1 %v2407_v56 }
 0x168   : > { %1792 = vmatprep.subr.bf16.mxu1 %v1791_v17 }
 0x16b   : > { %1794 = vmatpush3.bf16.msra.mxu1 %v2408_v3 }
 0x16c   : > { %1796 = vmatprep.subr.bf16.mxu1 %v1795_v55 }
 0x16e   : > { %1204 = vmatmul.mubr.f32.vlgmr.msra.gmra.mrb[32].mxu1 %v1137_v4 }
 0x16f   : > { %1798 = vmatpush3.bf16.msra.mxu1 %v2409_v38  ;;  %1306 = vmatprep.mubr.f32.mxu1 %v2119_v40  ;;  %v2414_v40 = vpack.c.bf16 %v2252_v48, %v2246_v46 }
 0x170   : > { %1800 = vmatprep.subr.bf16.mxu1 %v2410_v35 }
 0x173   : > { %1802 = vmatpush3.bf16.msra.mxu1 %v2411_v43 }
 0x174   : > { %1804 = vmatprep.subr.bf16.mxu1 %v1803_v58 }
 0x177   : > { %1806 = vmatpush3.bf16.msra.mxu1 %v2412_v14 }
 0x178   : > { %1808 = vmatprep.subr.bf16.mxu1 %v1807_v12 }
 0x17b   : > { %1810 = vmatpush3.bf16.msra.mxu1 %v2413_v16 }
 0x17c   : > { %1812 = vmatprep.subr.bf16.mxu1 %v1811_v62 }
 0x17f   : > { %1814 = vmatpush3.bf16.msra.mxu1 %v2414_v40 }
 0x180   : > { %1816 = vmatprep.subr.bf16.mxu1 %v1815_v28 }
 0x183   : > { %1818 = vmatpush3.bf16.msra.mxu1 %v2415_v13 }
 0x184   : > { %1820 = vmatprep.subr.bf16.mxu1 %v1819_v2 }
 0x187   : > { %1822 = vmatpush3.bf16.msra.mxu1 %v2416_v15 }
 0x188   : > { %1824 = vmatprep.subr.bf16.mxu1 %v1823_v5 }
 0x18b   : > { %1826 = vmatpush3.bf16.msra.mxu1 %v2417_v18 }
 0x18e   : > { %1307 = vmatmul.mubr.f32.vlgmr.msra.gmra.mrb[34].mxu1 %v1137_v4 }
 0x241   : > { %v1623_v29 = vpop.f32.mrb[32].mxu1 }
 0x242   : > { %v1624_v31 = vpop.f32.mrb[33].mxu1 }
 0x243   : > { %v1625_v32 = vadd.f32 %v1624_v31, %v1623_v29 }
 0x245   : > { %1209 = vst [vmem:[%s256_s11] sm:$0xff] %v1625_v32 }
 0x261   : > { %v1658_v33 = vpop.f32.mrb[34].mxu1 }
 0x262   : > { %v1659_v34 = vpop.f32.mrb[35].mxu1 }
 0x263   : > { %v1660_v7 = vadd.f32 %v1659_v34, %v1658_v33 }
 0x265   : > { %1312 = vst [vmem:[%s263_s14] sm:$0xff] %v1660_v7 }
 0x266 PF: > { %s15_s17 = sadd.s32 1, %s1973_s17   ;;  %s2418_s15 = smov %s1969_s16 }
 0x267   : > { %p12_p6 = scmp.ge.s32.totalorder %s15_s17, 4   ;;  %s2419_s16 = smov %s2421_s18 }
 0x269   :  { %14 = sbr.rel (!%p12_p6) target bundleno = 2 (0x2), region = 79 }

</bundles_post_ra>
